<compile_context>
chip_gen: v7x
topology: tpu7x:2x2x1
jax: 0.10.0
libtpu: 0.0.40
codegen_flags: <defaults>
</compile_context>

<pallas_src>
import math

import jax
import jax.numpy as jnp
from jax.experimental import pallas as pl
from jax.experimental.pallas import tpu as pltpu


def _round_up(x: int, m: int) -> int:
    return ((x + m - 1) // m) * m


def _erf_approx(x):
    """erf(x) via Abramowitz & Stegun 7.1.26 (max abs error ~1.5e-7).

    The divide is done with the EUP approximate reciprocal plus one Newton
    step (back to ~f32 precision) so it stays off the VALU slot.
    """
    z = jnp.abs(x)
    d = 1.0 + 0.3275911 * z
    t = pl.reciprocal(d, approx=True)
    t = t * (2.0 - d * t)                       # one Newton-Raphson refinement
    poly = t * (0.254829592
                + t * (-0.284496736
                       + t * (1.421413741
                              + t * (-1.453152027
                                     + t * 1.061405429))))
    y = 1.0 - poly * jnp.exp(-z * z)
    return jnp.where(x < 0.0, -y, y)


def _gelu_exact(x):
    """PyTorch nn.GELU (default, erf-based): 0.5 * x * (1 + erf(x/sqrt(2)))."""
    return 0.5 * x * (1.0 + _erf_approx(x * (1.0 / math.sqrt(2.0))))


def _mlp_kernel(x_ref, w1_ref, b1_ref, w2_ref, b2_ref, o_ref, acc_ref):
    """Grid = (row tiles, hidden chunks).

    Per (i, k):  acc[i] += gelu(x[i] @ W1[:, k] + b1[k]) @ W2[k, :]
    Finalize at the last k:  out[i] = acc[i] + b2.
    """
    k = pl.program_id(1)

    @pl.when(k == 0)
    def _init():
        acc_ref[...] = jnp.zeros_like(acc_ref)

    x = x_ref[...].astype(w1_ref.dtype)                      # bf16 for the MXU
    h = jnp.dot(x, w1_ref[...], preferred_element_type=jnp.float32)
    h = h + b1_ref[...]                                      # f32 bias
    h = _gelu_exact(h)                                       # f32, (tm, tk)
    acc_ref[...] += jnp.dot(h.astype(w2_ref.dtype), w2_ref[...],
                            preferred_element_type=jnp.float32)

    @pl.when(k == pl.num_programs(1) - 1)
    def _finalize():
        o_ref[...] = (acc_ref[...] + b2_ref[...]).astype(o_ref.dtype)


def _choose_tm(m: int, block_m: int) -> int:
    """Row tile: sublane-aligned; >=2 tiles on short inputs (megacore)."""
    if m >= 2 * block_m:
        return block_m
    tm = max(8, _round_up(-(-m // 2), 8))      # ~ceil(M/2), 8-aligned
    if tm > 128:
        tm = _round_up(tm, 128)                # keep MXU sublane passes full
    return min(tm, block_m)


def _choose_tk(hid_p: int, block_k: int) -> int:
    """Largest multiple-of-128 divisor of hid_p that is <= block_k."""
    cand = (min(block_k, hid_p) // 128) * 128
    while cand > 128:
        if hid_p % cand == 0:
            return cand
        cand -= 128
    return 128


def mlp_forward(x, w1, b1, w2, b2, *, block_m: int = 512, block_k: int = 512):
    """Fused MLP forward.

    x  : (..., in_features)           any float dtype (cast to w1.dtype in-kernel)
    w1 : (in_features, hidden)        bf16 recommended (pre-transposed vs torch)
    b1 : (1, hidden)                  f32
    w2 : (hidden, out_features)       bf16 recommended
    b2 : (1, out_features)            f32
    """
    in_f = x.shape[-1]
    hid = w1.shape[1]
    out_f = w2.shape[1]
    assert w1.shape == (in_f, hid)
    assert w2.shape == (hid, out_f)
    assert b1.shape == (1, hid) and b2.shape == (1, out_f)

    lead_shape = x.shape[:-1]
    x2 = x.reshape(-1, in_f)
    M = x2.shape[0]

    # --- lane-dense feature padding (weights/bias only; math stays exact) ---
    hid_p = _round_up(hid, 128)
    out_p = _round_up(out_f, 128)
    if hid_p != hid:
        w1 = jnp.pad(w1, ((0, 0), (0, hid_p - hid)))
        b1 = jnp.pad(b1, ((0, 0), (0, hid_p - hid)))
        w2 = jnp.pad(w2, ((0, hid_p - hid), (0, 0)))
    if out_p != out_f:
        w2 = jnp.pad(w2, ((0, 0), (0, out_p - out_f)))
        b2 = jnp.pad(b2, ((0, 0), (0, out_p - out_f)))
    b1 = b1.astype(jnp.float32)
    b2 = b2.astype(jnp.float32)

    # --- tiling ---
    tm = _choose_tm(M, block_m)
    tk = _choose_tk(hid_p, block_k)
    grid = (pl.cdiv(M, tm), hid_p // tk)

    # --- VMEM budget (double-buffered pipeline bufs + accumulator scratch) ---
    x_isz = int(jnp.dtype(x.dtype).itemsize)
    w_isz = int(jnp.dtype(w1.dtype).itemsize)
    vmem_need = (
        2 * tm * in_f * x_isz          # x tiles
        + 2 * in_f * tk * w_isz        # W1 chunks
        + 2 * tk * 4                   # b1 chunks
        + 2 * tk * out_p * w_isz       # W2 chunks
        + 2 * out_p * 4                # b2
        + 2 * tm * out_p * x_isz       # out tiles
        + tm * out_p * 4               # f32 accumulator scratch
    )
    vmem_limit = min(max(int(1.5 * vmem_need) + (4 << 20), 16 << 20), 64 << 20)

    cost = pl.CostEstimate(
        flops=2 * M * in_f * hid + 2 * M * hid * out_f,
        transcendentals=2 * M * hid,                     # exp + recip per elem
        bytes_accessed=(x2.size * x_isz + int(w1.size) * w_isz + int(b1.size) * 4
                        + int(w2.size) * w_isz + int(b2.size) * 4
                        + M * out_p * x_isz),
    )

    out = pl.pallas_call(
        _mlp_kernel,
        out_shape=jax.ShapeDtypeStruct((M, out_p), x.dtype),
        grid=grid,
        in_specs=[
            pl.BlockSpec((tm, in_f), lambda i, k: (i, 0)),     # x row tile
            pl.BlockSpec((in_f, tk), lambda i, k: (0, k)),     # W1 col chunk
            pl.BlockSpec((1, tk), lambda i, k: (0, k)),        # b1 chunk
            pl.BlockSpec((tk, out_p), lambda i, k: (k, 0)),    # W2 row chunk
            pl.BlockSpec((1, out_p), lambda i, k: (0, 0)),     # b2
        ],
        out_specs=pl.BlockSpec((tm, out_p), lambda i, k: (i, 0)),
        scratch_shapes=[pltpu.VMEM((tm, out_p), jnp.float32)],
        compiler_params=pltpu.CompilerParams(
            dimension_semantics=("parallel", "arbitrary"),
            vmem_limit_bytes=vmem_limit),
        cost_estimate=cost,
    )(x2, w1, b1, w2, b2)

    if out_p != out_f:
        out = out[:, :out_f]
    return out.reshape(*lead_shape, out_f)


class Mlp:
    """JAX/Pallas port of the PyTorch Mlp (fc1 -> GELU -> drop -> fc2 -> drop)."""

    def __init__(self, in_features, hidden_features=None, out_features=None,
                 drop: float = 0.0, *, key, block_m: int = 512, block_k: int = 512):
        out_features = out_features or in_features
        hidden_features = hidden_features or in_features
        k1, k2, k3, k4 = jax.random.split(key, 4)
        # PyTorch nn.Linear default init: U(-1/sqrt(fan_in), 1/sqrt(fan_in)).
        # Weights stored pre-transposed (in, out) and in bf16 (MXU-native);
        # biases stay f32.
        lim1 = 1.0 / math.sqrt(in_features)
        self.w1 = jax.random.uniform(k1, (in_features, hidden_features),
                                     jnp.float32, -lim1, lim1).astype(jnp.bfloat16)
        self.b1 = jax.random.uniform(k2, (1, hidden_features), jnp.float32,
                                     -lim1, lim1)
        lim2 = 1.0 / math.sqrt(hidden_features)
        self.w2 = jax.random.uniform(k3, (hidden_features, out_features),
                                     jnp.float32, -lim2, lim2).astype(jnp.bfloat16)
        self.b2 = jax.random.uniform(k4, (1, out_features), jnp.float32,
                                     -lim2, lim2)
        self.drop = drop  # drop=0.0 -> identity (see TODO at top of file)
        self.block_m = block_m
        self.block_k = block_k

    def __call__(self, x):
        return mlp_forward(x, self.w1, self.b1, self.w2, self.b2,
                           block_m=self.block_m, block_k=self.block_k)


def _mlp_reference(x, w1, b1, w2, b2):
    """Plain-JAX reference emulating the kernel's bf16-input / f32-accum path
    with exact erf GELU."""
    xf = x.astype(jnp.bfloat16).astype(jnp.float32)
    w1f = w1.astype(jnp.float32)
    w2f = w2.astype(jnp.float32)
    h = jnp.dot(xf, w1f, precision=jax.lax.Precision.HIGHEST) + b1.reshape(-1)
    h = jax.nn.gelu(h, approximate=False)
    h = h.astype(jnp.bfloat16).astype(jnp.float32)
    return jnp.dot(h, w2f, precision=jax.lax.Precision.HIGHEST) + b2.reshape(-1)


if __name__ == "__main__":
    key = jax.random.PRNGKey(0)
    k_params, k_x1, k_x2 = jax.random.split(key, 3)

    # Small Swin-style token MLP: (batch, tokens, channels), hidden = 4x.
    B, N, C = 2, 64, 32
    HID = 4 * C

    # block_m=64 -> 2 row tiles; block_k=128 -> 1 hidden chunk (plus the
    # out_f=32 -> 128 lane padding path) to exercise the tiled/pipelined code.
    mlp = Mlp(in_features=C, hidden_features=HID, out_features=C,
              drop=0.0, key=k_params, block_m=64, block_k=128)

    x = jax.random.normal(k_x1, (B, N, C), dtype=jnp.float32)
    out = mlp(x)
    jax.block_until_ready(out)

    ref = _mlp_reference(x.reshape(-1, C), mlp.w1, mlp.b1, mlp.w2,
                         mlp.b2).reshape(B, N, C)
    assert out.shape == (B, N, C)
    assert jnp.allclose(out, ref, rtol=2e-3, atol=3e-3), "fused MLP mismatch"

    # Ragged token count (exercises the partial last row-block, no jnp.pad).
    x_odd = jax.random.normal(k_x2, (3, 7, C), dtype=jnp.float32)
    out_odd = mlp(x_odd)
    jax.block_until_ready(out_odd)
    ref_odd = _mlp_reference(x_odd.reshape(-1, C), mlp.w1, mlp.b1, mlp.w2,
                             mlp.b2).reshape(3, 7, C)
    assert jnp.allclose(out_odd, ref_odd, rtol=2e-3, atol=3e-3), \
        "partial-block path mismatch"

    print("KERNEL_OK")
</pallas_src>

<mosaic_0001>
module attributes {stable_mosaic.version = 11 : i64} {
  func.func @_mlp_kernel(%arg0: i32, %arg1: i32, %arg2: memref<64x32xf32, #tpu.memory_space<vmem>>, %arg3: memref<32x128xbf16, #tpu.memory_space<vmem>>, %arg4: memref<1x128xf32, #tpu.memory_space<vmem>>, %arg5: memref<128x128xbf16, #tpu.memory_space<vmem>>, %arg6: memref<1x128xf32, #tpu.memory_space<vmem>>, %arg7: memref<64x128xf32, #tpu.memory_space<vmem>>, %arg8: memref<64x128xf32, #tpu.memory_space<vmem>>) attributes {dimension_semantics = [#tpu.dimension_semantics<parallel>, #tpu.dimension_semantics<arbitrary>], iteration_bounds = array<i64: 2, 1>, scalar_prefetch = 0 : i64, scratch_operands = 1 : i64, tpu.core_type = #tpu.core_type<tc>, window_params = [{transform_indices = @transform_0, window_bounds = array<i64: 64, 32>}, {transform_indices = @transform_1, window_bounds = array<i64: 32, 128>}, {transform_indices = @transform_2, window_bounds = array<i64: 1, 128>}, {transform_indices = @transform_3, window_bounds = array<i64: 128, 128>}, {pipeline_mode = #tpu.pipeline_mode<synchronous>, transform_indices = @transform_4, window_bounds = array<i64: 1, 128>}, {transform_indices = @transform_5, window_bounds = array<i64: 64, 128>}]} {
    %c0_i32 = arith.constant 0 : i32
    %0 = arith.cmpi eq, %arg1, %c0_i32 : i32
    %1 = arith.extui %0 : i1 to i32
    %c0_i32_0 = arith.constant 0 : i32
    %2 = arith.cmpi ne, %1, %c0_i32_0 : i32
    scf.if %2 {
      %cst_30 = arith.constant 0.000000e+00 : f32
      %62 = vector.broadcast %cst_30 : f32 to vector<64x128xf32>
      %c0_31 = arith.constant 0 : index
      %c0_32 = arith.constant 0 : index
      %63 = vector.load %arg8[%c0_31, %c0_32] : memref<64x128xf32, #tpu.memory_space<vmem>>, vector<64x128xf32>
      tpu.vector_store %arg8[%c0_31, %c0_32], %62 {strides = array<i32>} : memref<64x128xf32, #tpu.memory_space<vmem>>, vector<64x128xf32>,
    } else {
    }
    %c0 = arith.constant 0 : index
    %c0_1 = arith.constant 0 : index
    %3 = vector.load %arg2[%c0, %c0_1] : memref<64x32xf32, #tpu.memory_space<vmem>>, vector<64x32xf32>
    %4 = arith.truncf %3 : vector<64x32xf32> to vector<64x32xbf16>
    %c0_2 = arith.constant 0 : index
    %c0_3 = arith.constant 0 : index
    %5 = vector.load %arg3[%c0_2, %c0_3] : memref<32x128xbf16, #tpu.memory_space<vmem>>, vector<32x128xbf16>
    %cst = arith.constant dense<0.000000e+00> : vector<64x128xf32>
    %6 = tpu.matmul %4, %5, %cst {dimension_numbers = #tpu.dot_dimension_numbers<[1], [0], [0], [1], [0, 0, 1, 1], [], []>} : vector<64x32xbf16>, vector<32x128xbf16>, vector<64x128xf32> -> vector<64x128xf32>
    %c0_4 = arith.constant 0 : index
    %c0_5 = arith.constant 0 : index
    %7 = vector.load %arg4[%c0_4, %c0_5] : memref<1x128xf32, #tpu.memory_space<vmem>>, vector<1x128xf32>
    %8 = vector.broadcast %7 : vector<1x128xf32> to vector<64x128xf32>
    %9 = arith.addf %6, %8 : vector<64x128xf32>
    %cst_6 = arith.constant 5.000000e-01 : f32
    %10 = vector.broadcast %cst_6 : f32 to vector<64x128xf32>
    %11 = arith.mulf %10, %9 : vector<64x128xf32>
    %cst_7 = arith.constant 0.707106769 : f32
    %12 = vector.broadcast %cst_7 : f32 to vector<64x128xf32>
    %13 = arith.mulf %9, %12 : vector<64x128xf32>
    %14 = math.absf %13 : vector<64x128xf32>
    %cst_8 = arith.constant 0.327591091 : f32
    %15 = vector.broadcast %cst_8 : f32 to vector<64x128xf32>
    %16 = arith.mulf %15, %14 : vector<64x128xf32>
    %cst_9 = arith.constant 1.000000e+00 : f32
    %17 = vector.broadcast %cst_9 : f32 to vector<64x128xf32>
    %18 = arith.addf %17, %16 : vector<64x128xf32>
    %19 = tpu.reciprocal %18 {approx = true} : vector<64x128xf32> -> vector<64x128xf32>
    %20 = arith.mulf %18, %19 : vector<64x128xf32>
    %cst_10 = arith.constant 2.000000e+00 : f32
    %21 = vector.broadcast %cst_10 : f32 to vector<64x128xf32>
    %22 = arith.subf %21, %20 : vector<64x128xf32>
    %23 = arith.mulf %19, %22 : vector<64x128xf32>
    %cst_11 = arith.constant 1.06140542 : f32
    %24 = vector.broadcast %cst_11 : f32 to vector<64x128xf32>
    %25 = arith.mulf %23, %24 : vector<64x128xf32>
    %cst_12 = arith.constant -1.45315206 : f32
    %26 = vector.broadcast %cst_12 : f32 to vector<64x128xf32>
    %27 = arith.addf %26, %25 : vector<64x128xf32>
    %28 = arith.mulf %23, %27 : vector<64x128xf32>
    %cst_13 = arith.constant 1.42141378 : f32
    %29 = vector.broadcast %cst_13 : f32 to vector<64x128xf32>
    %30 = arith.addf %29, %28 : vector<64x128xf32>
    %31 = arith.mulf %23, %30 : vector<64x128xf32>
    %cst_14 = arith.constant -0.284496725 : f32
    %32 = vector.broadcast %cst_14 : f32 to vector<64x128xf32>
    %33 = arith.addf %32, %31 : vector<64x128xf32>
    %34 = arith.mulf %23, %33 : vector<64x128xf32>
    %cst_15 = arith.constant 0.254829586 : f32
    %35 = vector.broadcast %cst_15 : f32 to vector<64x128xf32>
    %36 = arith.addf %35, %34 : vector<64x128xf32>
    %37 = arith.mulf %23, %36 : vector<64x128xf32>
    %cst_16 = arith.constant 0.000000e+00 : f32
    %38 = vector.broadcast %cst_16 : f32 to vector<64x128xf32>
    %39 = arith.subf %38, %14 : vector<64x128xf32>
    %40 = arith.mulf %39, %14 : vector<64x128xf32>
    %41 = math.exp %40 : vector<64x128xf32>
    %42 = arith.mulf %37, %41 : vector<64x128xf32>
    %cst_17 = arith.constant 1.000000e+00 : f32
    %43 = vector.broadcast %cst_17 : f32 to vector<64x128xf32>
    %44 = arith.subf %43, %42 : vector<64x128xf32>
    %cst_18 = arith.constant 0.000000e+00 : f32
    %45 = vector.broadcast %cst_18 : f32 to vector<64x128xf32>
    %46 = arith.cmpf olt, %13, %45 : vector<64x128xf32>
    %cst_19 = arith.constant 0.000000e+00 : f32
    %47 = vector.broadcast %cst_19 : f32 to vector<64x128xf32>
    %48 = arith.subf %47, %44 : vector<64x128xf32>
    %49 = arith.select %46, %48, %44 : vector<64x128xi1>, vector<64x128xf32>
    %cst_20 = arith.constant 1.000000e+00 : f32
    %50 = vector.broadcast %cst_20 : f32 to vector<64x128xf32>
    %51 = arith.addf %50, %49 : vector<64x128xf32>
    %52 = arith.mulf %11, %51 : vector<64x128xf32>
    %c0_21 = arith.constant 0 : index
    %c0_22 = arith.constant 0 : index
    %53 = vector.load %arg8[%c0_21, %c0_22] : memref<64x128xf32, #tpu.memory_space<vmem>>, vector<64x128xf32>
    %54 = arith.truncf %52 : vector<64x128xf32> to vector<64x128xbf16>
    %c0_23 = arith.constant 0 : index
    %c0_24 = arith.constant 0 : index
    %55 = vector.load %arg5[%c0_23, %c0_24] : memref<128x128xbf16, #tpu.memory_space<vmem>>, vector<128x128xbf16>
    %cst_25 = arith.constant dense<0.000000e+00> : vector<64x128xf32>
    %56 = tpu.matmul %54, %55, %cst_25 {dimension_numbers = #tpu.dot_dimension_numbers<[1], [0], [0], [1], [0, 0, 1, 1], [], []>} : vector<64x128xbf16>, vector<128x128xbf16>, vector<64x128xf32> -> vector<64x128xf32>
    %57 = arith.addf %53, %56 : vector<64x128xf32>
    %c0_26 = arith.constant 0 : index
    %c0_27 = arith.constant 0 : index
    %58 = vector.load %arg8[%c0_26, %c0_27] : memref<64x128xf32, #tpu.memory_space<vmem>>, vector<64x128xf32>
    tpu.vector_store %arg8[%c0_26, %c0_27], %57 {strides = array<i32>} : memref<64x128xf32, #tpu.memory_space<vmem>>, vector<64x128xf32>,
    %c0_i32_28 = arith.constant 0 : i32
    %59 = arith.cmpi eq, %arg1, %c0_i32_28 : i32
    %60 = arith.extui %59 : i1 to i32
    %c0_i32_29 = arith.constant 0 : i32
    %61 = arith.cmpi ne, %60, %c0_i32_29 : i32
    scf.if %61 {
      %c0_30 = arith.constant 0 : index
      %c0_31 = arith.constant 0 : index
      %62 = vector.load %arg8[%c0_30, %c0_31] : memref<64x128xf32, #tpu.memory_space<vmem>>, vector<64x128xf32>
      %c0_32 = arith.constant 0 : index
      %c0_33 = arith.constant 0 : index
      %63 = vector.load %arg6[%c0_32, %c0_33] : memref<1x128xf32, #tpu.memory_space<vmem>>, vector<1x128xf32>
      %64 = vector.broadcast %63 : vector<1x128xf32> to vector<64x128xf32>
      %65 = arith.addf %62, %64 : vector<64x128xf32>
      %c0_34 = arith.constant 0 : index
      %c0_35 = arith.constant 0 : index
      %66 = vector.load %arg7[%c0_34, %c0_35] : memref<64x128xf32, #tpu.memory_space<vmem>>, vector<64x128xf32>
      tpu.vector_store %arg7[%c0_34, %c0_35], %65 {strides = array<i32>} : memref<64x128xf32, #tpu.memory_space<vmem>>, vector<64x128xf32>,
    } else {
    }
    return
  }
  func.func @transform_0(%arg0: i32, %arg1: i32) -> (i32, i32) {
    %c0_i32 = arith.constant 0 : i32
    %c0_i32_0 = arith.constant 0 : i32
    return %arg0, %c0_i32 : i32, i32
  }
  func.func @transform_1(%arg0: i32, %arg1: i32) -> (i32, i32) {
    %c0_i32 = arith.constant 0 : i32
    %c0_i32_0 = arith.constant 0 : i32
    return %c0_i32, %arg1 : i32, i32
  }
  func.func @transform_2(%arg0: i32, %arg1: i32) -> (i32, i32) {
    %c0_i32 = arith.constant 0 : i32
    %c0_i32_0 = arith.constant 0 : i32
    return %c0_i32, %arg1 : i32, i32
  }
  func.func @transform_3(%arg0: i32, %arg1: i32) -> (i32, i32) {
    %c0_i32 = arith.constant 0 : i32
    %c0_i32_0 = arith.constant 0 : i32
    return %arg1, %c0_i32 : i32, i32
  }
  func.func @transform_4(%arg0: i32, %arg1: i32) -> (i32, i32) {
    %c0_i32 = arith.constant 0 : i32
    %c0_i32_0 = arith.constant 0 : i32
    %c0_i32_1 = arith.constant 0 : i32
    return %c0_i32, %c0_i32_0 : i32, i32
  }
  func.func @transform_5(%arg0: i32, %arg1: i32) -> (i32, i32) {
    %c0_i32 = arith.constant 0 : i32
    %c0_i32_0 = arith.constant 0 : i32
    return %arg0, %c0_i32 : i32, i32
  }
}

</mosaic_0001>

<bundles_post_ra>
// kernel: tpu_custom_call.1
= control target key start
LH: loop header
LB: loop body
LE: loop exit
PB: predicated region body
PF: predicated region fallthrough
CT: control target
= control target key end

     0   :  { %10 = vsyncpa [#allocation4], 0  ;;  %s1564_s0 = inlined_call_operand.vmem [shape: f32[128,32], index: 0, kind: input, shape index: {}]   ;;  %s1565_s1 = inlined_call_operand.vmem [shape: bf16[32,128], index: 1, kind: input, shape index: {}]   ;;  %s1566_s2 = inlined_call_operand.vmem [shape: f32[1,128], index: 2, kind: input, shape index: {}]   ;;  %s1567_s3 = inlined_call_operand.vmem [shape: bf16[128,128], index: 3, kind: input, shape index: {}]   ;;  %s1568_s4 = inlined_call_operand.vmem [shape: f32[1,128], index: 4, kind: input, shape index: {}]   ;;  %s1569_s5 = inlined_call_operand.hbm [shape: f32[128,128], index: 5, kind: output, shape index: {}]  }
   0x1   :  { %12 = vsyncpa [#allocation4 + $0x1], 0  ;;  %s1265_s18 = smov 0   ;;  %s1267_s19 = smov 0  }
   0x2   :  { %s1269_s20 = smov 0   ;;  %s1271_s21 = smov 0  }
   0x3   :  { %s1273_s22 = smov 0   ;;  %s1275_s23 = smov 0  }
   0x4 LB: > { %s966_s24 = sadd.s32 4294967295, %s1230_s23   ;;  %s967_s25 = sadd.s32 4294967294, %s1230_s23   ;;  %s1230_s23 = sphi %s1275_s23, %s18_s23   ;;  %s1226_s22 = sphi %s1273_s22, %s1576_s22   ;;  %s1222_s21 = sphi %s1271_s21, %s1575_s21   ;;  %s1218_s20 = sphi %s1269_s20, %s1574_s20   ;;  %s1214_s19 = sphi %s1267_s19, %s1573_s19   ;;  %s1210_s18 = sphi %s1265_s18, %s1572_s18  }
   0x5   : > { %s30_s26 = sadd.s32 1, %s1226_s22  ;;  %s162_s27 = sadd.s32 1, %s1218_s20 }
   0x6   : > { %p32_p0 = scmp.ge.s32.totalorder %s30_s26, 2  ;;  %p172_p1 = scmp.ne.s32.totalorder %s1218_s20, %s1214_s19 }
   0x7   : > { %p173_p2 = scmp.eq.s32.totalorder %s966_s24, 1  ;;  %p178_p3 = scmp.ne.s32.totalorder %s1214_s19, %s1210_s18 }
   0x8   : > { %s1578_s26 = smov (%p32_p0, %s30_s26), 0  ;;  %p179_p5 = scmp.eq.s32.totalorder %s967_s25, 1 }
   0x9   : > { %p1305_p4 = por %p173_p2, %p172_p1  ;;  %s159_s29 = ssub.s32 %s1226_s22, %s1578_s26 }
   0xa   : > { %p973_p6 = scmp.ge.s32.totalorder %s1230_s23, 1  ;;  %p160_p7 = scmp.eq.s32.totalorder %s159_s29, 0 }
   0xb   : > { %p1312_p8 = por %p179_p5, %p178_p3  ;;  %p231_p9 = scmp.lt.s32.totalorder %s1230_s23, 3 }
   0xc   : > { %s1318_s6 = scalar_select %p160_p7, %s1218_s20, %s162_s27  }
   0xd   : > { %p232_p10 = pnand %p973_p6, %p231_p9 }
   0xe   : > { %v1110_v0 = vld [vmem:[%s1565_s1] sm:$0xff] (!%p232_p10)   ;;  %s975_s9 = sshll.u32 (!%p232_p10), %s1222_s21, 3  ;;  %v1111_v1 = vld [vmem:[%s1565_s1 + $0x8] sm:$0xff] (!%p232_p10)   ;;  %vm339_vm0 = vcmask (!%p232_p10), 261120   ;;  %v1114_v16 = vld [vmem:[%s1567_s3 + $0x10] sm:$0xff] (!%p232_p10)   ;;  %s268_s25 = sand.u32 (!%p232_p10), 1, %s1214_s19  }
   0xf   : > { %235 = sbr.rel (%p232_p10) target bundleno = 546 (0x222), region = 40  ;;  %p272_p11 = scmp.lt.s32.totalorder (!%p232_p10), %s975_s9, 15  ;;  %1017 = vmatprep.subr.bf16.mxu0 (!%p232_p10), %v1110_v0  ;;  %v1112_v14 = vld [vmem:[%s1567_s3] sm:$0xff] (!%p232_p10)   ;;  %v1113_v15 = vld [vmem:[%s1567_s3 + $0x8] sm:$0xff] (!%p232_p10)   ;;  %v1115_v17 = vld [vmem:[%s1567_s3 + $0x18] sm:$0xff] (!%p232_p10)  }
  0x10   : > { %1018 = vmatpush3.bf16.msra.mxu0 (!%p232_p10), %v1110_v0  ;;  %1029 = vmatprep.subr.bf16.mxu1 (!%p232_p10), %v1112_v14  ;;  %v1116_v18 = vld [vmem:[%s1567_s3 + $0x20] sm:$0xff] (!%p232_p10)   ;;  %v1117_v19 = vld [vmem:[%s1567_s3 + $0x28] sm:$0xff] (!%p232_p10)   ;;  %v1118_v20 = vld [vmem:[%s1567_s3 + $0x30] sm:$0xff] (!%p232_p10)   ;;  %s974_s27 = sshll.u32 (!%p232_p10), %s268_s25, 6 }
  0x11   : > { %1019 = vmatprep.subr.bf16.mxu0 (!%p232_p10), %v1111_v1  ;;  %1030 = vmatpush3.bf16.msra.mxu1 (!%p232_p10), %v1112_v14  ;;  %v1119_v21 = vld [vmem:[%s1567_s3 + $0x38] sm:$0xff] (!%p232_p10)   ;;  %v977_v22 = vld [vmem:[%s1566_s2] ss:$0 sm:$0xff] (!%p232_p10)  ;;  %s270_s8 = scalar_lea.vmem (!%p232_p10), [#allocation3], %s974_s27 }
  0x12   : > { %1031 = vmatprep.subr.bf16.mxu1 (!%p232_p10), %v1113_v15  ;;  %s854_s10 = sshll.u32 (!%p232_p10), %s270_s8, 4  ;;  %s1514_s10 = int_to_ptr.vmem [resolvable:$true] %s854_s10 }
  0x13   : > { %s1152_s14 = scalar_lea.vmem (!%p232_p10), %s1514_s10, 1024 }
  0x14   : > { %1020 = vmatpush3.bf16.msra.mxu0 (!%p232_p10), %v1111_v1  ;;  %p1153_p12 = scmp.ne.s32.totalorder (!%p232_p10), %s1514_s10, %s1152_s14 }
  0x15   : > { %1032 = vmatpush3.bf16.msra.mxu1 (!%p232_p10), %v1113_v15 }
  0x16   : > { %s1580_s9 = smov (!%p272_p11, %s975_s9), 15  ;;  %1033 = vmatprep.subr.bf16.mxu1 %v1114_v16  ;;  %p1154_p13 = pnand %p1153_p12, %p1305_p4 }
  0x17   : > { %s976_s12 = sshll.u32 %s1580_s9, 3  ;;  %s998_s9 = sshll.u32 %s1222_s21, 10 }
  0x18   : > { %s275_s15 = scalar_lea.vmem %s1564_s0, %s976_s12  ;;  %s1512_s13 = scalar_lea.hbm %s1569_s5, %s998_s9 }
  0x19   : > { %v304_v2 = vld [vmem:[%s275_s15] sm:$0xff]  ;;  %v305_v3 = vld [vmem:[%s275_s15 + $0x8] sm:$0xff]  ;;  %v306_v4 = vld [vmem:[%s275_s15 + $0x10] sm:$0xff]  ;;  %1034 = vmatpush3.bf16.msra.mxu1 %v1114_v16  ;;  %s1518_s21 = scalar_lea.sflag [#allocation4], %s268_s25  ;;  %p1155_p0 = pneg %p1154_p13 }
  0x1a   : > { %v312_v5 = vpack.c.bf16 %v305_v3, %v304_v2  ;;  %v307_v6 = vld [vmem:[%s275_s15 + $0x18] sm:$0xff]  ;;  %v308_v7 = vld [vmem:[%s275_s15 + $0x20] sm:$0xff]  ;;  %v309_v8 = vld [vmem:[%s275_s15 + $0x28] sm:$0xff]  ;;  %1035 = vmatprep.subr.bf16.mxu1 %v1115_v17 }
  0x1b   : > { %v313_v9 = vpack.c.bf16 %v307_v6, %v306_v4  ;;  %v314_v10 = vpack.c.bf16 %v309_v8, %v308_v7  ;;  %v310_v11 = vld [vmem:[%s275_s15 + $0x30] sm:$0xff]  ;;  %v311_v12 = vld [vmem:[%s275_s15 + $0x38] sm:$0xff]  ;;  %s1232_s15 = smov [#allocation3]  }
  0x1c   : > { %1021 = vmatprep.mubr.msk.bf16.mxu0 %vm339_vm0, %v312_v5  ;;  %v315_v13 = vpack.c.bf16 %v311_v12, %v310_v11  ;;  %s1156_s16 = sshll.u32 %s1232_s15, 4  ;;  %s1157_s16 = int_to_ptr.vmem [resolvable:$false] %s1156_s16 }
  0x1d   : > { %1022 = vmatmul.mubr.msk.bf16.vlgmr.msra.gmra.mrb[0].mxu0 %vm339_vm0, %v313_v9  ;;  %1036 = vmatpush3.bf16.msra.mxu1 %v1115_v17  ;;  %s1158_s17 = scalar_lea.vmem %s1157_s16, 2048  ;;  %p1159_p1 = scmp.lt.s32.totalorder %s1514_s10, %s1157_s16 }
  0x1e   : > { %1025 = vmatprep.mubr.msk.bf16.mxu0 %vm339_vm0, %v314_v10  ;;  %1037 = vmatprep.subr.bf16.mxu1 %v1116_v18  ;;  %p1160_p2 = scmp.lt.s32.totalorder %s1158_s17, %s1152_s14 }
  0x20   : > { %p1161_p3 = por %p1160_p2, %p1159_p1 }
  0x21   : > { %1038 = vmatpush3.bf16.msra.mxu1 %v1116_v18 }
  0x22   : > { %1039 = vmatprep.subr.bf16.mxu1 %v1117_v19  ;;  %p1162_p5 = pnand %p1161_p3, %p1155_p0 }
  0x25   : > { %1026 = vmatmul.mubr.msk.bf16.gmra.mrb[4].mxu0 %vm339_vm0, %v315_v13  ;;  %1040 = vmatpush3.bf16.msra.mxu1 %v1117_v19 }
  0x26   : > { %1041 = vmatprep.subr.bf16.mxu1 %v1118_v20 }
  0x29   : > { %1042 = vmatpush3.bf16.msra.mxu1 %v1118_v20 }
  0x2a   : > { %1043 = vmatprep.subr.bf16.mxu1 %v1119_v21 }
  0x2d   : > { %1044 = vmatpush3.bf16.msra.mxu1 %v1119_v21 }
  0xf0   : > { %v1023_v23 = vpop.f32.mrb[0].mxu0 }
  0xf1   : > { %v395_v24 = vadd.f32 %v1023_v23, %v977_v22  ;;  %v386_v25 = vpop.f32.mrb[1].mxu0 }
  0xf2   : > { %v1357_v26 = vadd.f32 %v977_v22, %v386_v25  ;;  %v1024_v27 = vpop.f32.mrb[2].mxu0 }
  0xf3   : > { %v1359_v28 = vmul.f32 0.70710677, %v395_v24  ;;  %v1361_v29 = vadd.f32 %v1024_v27, %v977_v22  ;;  %v389_v30 = vpop.f32.mrb[3].mxu0  ;;  %v1401_v3 = vmul.f32 0.5, %v395_v24 }
  0xf4   : > { %v1364_v31 = vmul.f32 0.70710677, %v1357_v26  ;;  %v1366_v32 = vadd.f32 %v977_v22, %v389_v30 }
  0xf5   : > { %v435_v33 = vand.u32 2147483647, %v1359_v28  ;;  %v1370_v34 = vmul.f32 0.70710677, %v1361_v29  ;;  %vm611_vm1 = vcmp.lt.f32.partialorder %v1359_v28, 0.0 }
  0xf6   : > { %v433_v35 = vand.u32 2147483647, %v1364_v31  ;;  %v1374_v36 = vmul.f32 0.70710677, %v1366_v32  ;;  %vm609_vm2 = vcmp.lt.f32.partialorder %v1364_v31, 0.0 }
  0xf7   : > { %v443_v37 = vmul.f32 0.3275911, %v435_v33  ;;  %v436_v38 = vand.u32 2147483647, %v1370_v34  ;;  %v563_v53 = vsub.f32 0.0, %v435_v33  ;;  %vm612_vm3 = vcmp.lt.f32.partialorder %v1370_v34, 0.0 }
  0xf8   : > { %v441_v39 = vmul.f32 0.3275911, %v433_v35  ;;  %v434_v40 = vand.u32 2147483647, %v1374_v36  ;;  %v1027_v43 = vpop.f32.mrb[4].mxu0  ;;  %v561_v59 = vsub.f32 0.0, %v433_v35 }
  0xf9   : > { %v451_v41 = vadd.f32 1.0, %v443_v37  ;;  %v444_v42 = vmul.f32 0.3275911, %v436_v38  ;;  %v402_v46 = vpop.f32.mrb[5].mxu0  ;;  %v1378_v51 = vadd.f32 %v1027_v43, %v977_v22  ;;  %v571_v61 = vmul.f32 %v563_v53, %v435_v33 }
  0xfa   : > { %v449_v44 = vadd.f32 1.0, %v441_v39  ;;  %v442_v45 = vmul.f32 0.3275911, %v434_v40  ;;  %v1028_v48 = vpop.f32.mrb[6].mxu0  ;;  %v1380_v52 = vadd.f32 %v977_v22, %v402_v46  ;;  %v564_v62 = vsub.f32 0.0, %v436_v38 }
  0xfb   : > { %1120 = vrcp.f32 %v451_v41  ;;  %v452_v47 = vadd.f32 1.0, %v444_v42  ;;  %v405_v49 = vpop.f32.mrb[7].mxu0  ;;  %v1382_v54 = vadd.f32 %v1028_v48, %v977_v22  ;;  %v1385_v55 = vmul.f32 0.70710677, %v1378_v51 }
  0xfc   : > { %1122 = vrcp.f32 %v449_v44  ;;  %v450_v50 = vadd.f32 1.0, %v442_v45  ;;  %v1387_v56 = vadd.f32 %v977_v22, %v405_v49  ;;  %v1390_v57 = vmul.f32 0.70710677, %v1380_v52 }
  0xfd   : > { %1124 = vrcp.f32 %v452_v47  ;;  %v1393_v58 = vmul.f32 0.70710677, %v1382_v54  ;;  %v439_v60 = vand.u32 2147483647, %v1385_v55  ;;  %v562_v4 = vsub.f32 0.0, %v434_v40 }
  0xfe   : > { %1126 = vrcp.f32 %v450_v50  ;;  %v437_v63 = vand.u32 2147483647, %v1390_v57  ;;  %v1399_v2 = vmul.f32 0.70710677, %v1387_v56  ;;  %v569_v8 = vmul.f32 %v561_v59, %v433_v35 }
  0xff   : > { %v440_v0 = vand.u32 2147483647, %v1393_v58  ;;  %v447_v1 = vmul.f32 0.3275911, %v439_v60  ;;  %v567_v10 = vsub.f32 0.0, %v439_v60  ;;  %v572_v15 = vmul.f32 %v564_v62, %v436_v38 }
 0x100   : > { %v445_v5 = vmul.f32 0.3275911, %v437_v63  ;;  %v438_v11 = vand.u32 2147483647, %v1399_v2  ;;  %v581_v14 = vmul.f32 1.442695, %v571_v61  ;;  %v570_v21 = vmul.f32 %v562_v4, %v434_v40 }
 0x101   : > { %v448_v6 = vmul.f32 0.3275911, %v440_v0  ;;  %v455_v9 = vadd.f32 1.0, %v447_v1  ;;  %v565_v18 = vsub.f32 0.0, %v437_v63  ;;  %v577_v25 = vmul.f32 1.442695, %v569_v8 }
 0x102   : > { %v453_v16 = vadd.f32 1.0, %v445_v5  ;;  %v446_v22 = vmul.f32 0.3275911, %v438_v11  ;;  %v575_v27 = vmul.f32 %v567_v10, %v439_v60  ;;  %v568_v30 = vsub.f32 0.0, %v440_v0 }
 0x103   : > { %1128 = vrcp.f32 %v455_v9  ;;  %v1404_v19 = vadd.f32 1.0, %v448_v6  ;;  %v573_v42 = vmul.f32 %v565_v18, %v437_v63  ;;  %v579_v45 = vmul.f32 1.442695, %v570_v21 }
 0x104   : > { %1130 = vrcp.f32 %v453_v16  ;;  %v1408_v37 = vadd.f32 1.0, %v446_v22  ;;  %v589_v46 = vmul.f32 1.442695, %v575_v27  ;;  %v576_v48 = vmul.f32 %v568_v30, %v440_v0 }
 0x105   : > { %v1121_v7 = vpop.eup %1120  ;;  %1132 = vpow2.f32 %v581_v14  ;;  %v585_v60 = vmul.f32 1.442695, %v573_v42  ;;  %v566_v61 = vsub.f32 0.0, %v438_v11  ;;  %v1423_v4 = vmul.f32 0.5, %v1357_v26 }
 0x106   : > { %v1123_v12 = vpop.eup %1122  ;;  %v467_v13 = vmul.f32 %v1121_v7, %v451_v41  ;;  %v583_v41 = vmul.f32 1.442695, %v572_v15  ;;  %1134 = vrcp.f32 %v1404_v19  ;;  %v591_v5 = vmul.f32 1.442695, %v576_v48 }
 0x107   : > { %v465_v17 = vmul.f32 %v1123_v12, %v449_v44  ;;  %v1125_v23 = vpop.eup %1124  ;;  %1136 = vrcp.f32 %v1408_v37  ;;  %v574_v15 = vmul.f32 %v566_v61, %v438_v11  ;;  %vm610_vm4 = vcmp.lt.f32.partialorder %v1374_v36, 0.0 }
 0x108   : > { %v475_v20 = vsub.f32 2.0, %v467_v13  ;;  %v468_v35 = vmul.f32 %v1125_v23, %v452_v47  ;;  %v1127_v38 = vpop.eup %1126  ;;  %1138 = vpow2.f32 %v577_v25  ;;  %vm615_vm5 = vcmp.lt.f32.partialorder %v1385_v55, 0.0 }
 0x109   : > { %v473_v24 = vsub.f32 2.0, %v465_v17  ;;  %v466_v44 = vmul.f32 %v1127_v38, %v450_v50  ;;  %1140 = vpow2.f32 %v583_v41  ;;  %v1438_v41 = vmul.f32 1.442695, %v574_v15 }
 0x10a   : > { %v1406_v33 = vmul.f32 %v1121_v7, %v475_v20  ;;  %v476_v43 = vsub.f32 2.0, %v468_v35  ;;  %1142 = vpow2.f32 %v579_v45  ;;  %vm613_vm6 = vcmp.lt.f32.partialorder %v1390_v57, 0.0 }
 0x10b   : > { %v1410_v39 = vmul.f32 %v1123_v12, %v473_v24  ;;  %v474_v59 = vsub.f32 2.0, %v466_v44  ;;  %1144 = vpow2.f32 %v589_v46  ;;  %v1430_v24 = vmul.f32 0.5, %v1361_v29 }
 0x10c   : > { %v491_v40 = vmul.f32 1.0614054, %v1406_v33  ;;  %v1416_v53 = vmul.f32 %v1125_v23, %v476_v43  ;;  %1146 = vpow2.f32 %v585_v60  ;;  %vm616_vm7 = vcmp.lt.f32.partialorder %v1393_v58, 0.0 }
 0x10d   : > { %v489_v47 = vmul.f32 1.0614054, %v1410_v39  ;;  %v1420_v1 = vmul.f32 %v1127_v38, %v474_v59  ;;  %v1129_v0 = vpop.eup %1128  ;;  %1148 = vpow2.f32 %v591_v5  ;;  %v423_v55 = vmul.f32 0.5, %v1378_v51 }
 0x10e   : > { %v499_v49 = vadd.f32 -1.4531521, %v491_v40  ;;  %v492_v50 = vmul.f32 1.0614054, %v1416_v53  ;;  %v1131_v7 = vpop.eup %1130  ;;  %v471_v12 = vmul.f32 %v1129_v0, %v455_v9  ;;  %1150 = vpow2.f32 %v1438_v41 }
 0x10f   : > { %v497_v62 = vadd.f32 -1.4531521, %v489_v47  ;;  %v490_v13 = vmul.f32 1.0614054, %v1420_v1  ;;  %v469_v14 = vmul.f32 %v1131_v7, %v453_v16  ;;  %v1133_v18 = vpop.eup %1132  ;;  %vm614_vm8 = vcmp.lt.f32.partialorder %v1399_v2, 0.0 }
 0x110   : > { %v507_v63 = vmul.f32 %v499_v49, %v1406_v33  ;;  %v500_v10 = vadd.f32 -1.4531521, %v492_v50  ;;  %v479_v21 = vsub.f32 2.0, %v471_v12  ;;  %v1135_v23 = vpop.eup %1134  ;;  %v422_v58 = vmul.f32 0.5, %v1387_v56 }
 0x111   : > { %v505_v6 = vmul.f32 %v497_v62, %v1410_v39  ;;  %v498_v22 = vadd.f32 -1.4531521, %v490_v13  ;;  %v477_v25 = vsub.f32 2.0, %v469_v14  ;;  %v472_v11 = vmul.f32 %v1135_v23, %v1404_v19  ;;  %v1137_v35 = vpop.eup %1136 }
 0x112   : > { %v515_v8 = vadd.f32 1.4214138, %v507_v63  ;;  %v508_v26 = vmul.f32 %v500_v10, %v1416_v53  ;;  %v1433_v30 = vmul.f32 %v1129_v0, %v479_v21  ;;  %v1139_v29 = vpop.eup %1138  ;;  %v470_v19 = vmul.f32 %v1137_v35, %v1408_v37 }
 0x113   : > { %v513_v17 = vadd.f32 1.4214138, %v505_v6  ;;  %v1436_v38 = vmul.f32 %v1131_v7, %v477_v25  ;;  %v506_v42 = vmul.f32 %v498_v22, %v1420_v1  ;;  %v480_v46 = vsub.f32 2.0, %v472_v11  ;;  %v1141_v48 = vpop.eup %1140 }
 0x114   : > { %v523_v20 = vmul.f32 %v515_v8, %v1406_v33  ;;  %v516_v16 = vadd.f32 1.4214138, %v508_v26  ;;  %v495_v45 = vmul.f32 1.0614054, %v1433_v30  ;;  %v1143_v60 = vpop.eup %1142  ;;  %v478_v6 = vsub.f32 2.0, %v470_v19 }
 0x115   : > { %v521_v9 = vmul.f32 %v513_v17, %v1410_v39  ;;  %v493_v47 = vmul.f32 1.0614054, %v1436_v38  ;;  %v514_v49 = vadd.f32 1.4214138, %v506_v42  ;;  %v1447_v50 = vmul.f32 %v1135_v23, %v480_v46  ;;  %v1449_v0 = vpop.eup %1144 }
 0x116   : > { %v531_v27 = vadd.f32 -0.28449672, %v523_v20  ;;  %v524_v44 = vmul.f32 %v516_v16, %v1416_v53  ;;  %v503_v63 = vadd.f32 -1.4531521, %v495_v45  ;;  %v1147_v14 = vpop.eup %1146  ;;  %v1458_v17 = vmul.f32 %v1137_v35, %v478_v6 }
 0x117   : > { %v529_v40 = vadd.f32 -0.28449672, %v521_v9  ;;  %v501_v5 = vadd.f32 -1.4531521, %v493_v47  ;;  %v522_v7 = vmul.f32 %v514_v49, %v1420_v1  ;;  %v496_v13 = vmul.f32 1.0614054, %v1447_v50  ;;  %v1149_v25 = vpop.eup %1148 }
 0x118   : > { %v539_v43 = vmul.f32 %v531_v27, %v1406_v33  ;;  %v532_v62 = vadd.f32 -0.28449672, %v524_v44  ;;  %v511_v12 = vmul.f32 %v503_v63, %v1433_v30  ;;  %v494_v27 = vmul.f32 1.0614054, %v1458_v17 }
 0x119   : > { %v537_v59 = vmul.f32 %v529_v40, %v1410_v39  ;;  %v509_v15 = vmul.f32 %v501_v5, %v1436_v38  ;;  %v530_v20 = vadd.f32 -0.28449672, %v522_v7 }
 0x11a   : > { %v547_v61 = vadd.f32 0.2548296, %v539_v43  ;;  %v540_v10 = vmul.f32 %v532_v62, %v1416_v53  ;;  %v519_v23 = vadd.f32 1.4214138, %v511_v12  ;;  %v502_v43 = vadd.f32 -1.4531521, %v494_v27 }
 0x11b   : > { %v545_v8 = vadd.f32 0.2548296, %v537_v59  ;;  %v517_v9 = vadd.f32 1.4214138, %v509_v15  ;;  %v538_v16 = vmul.f32 %v530_v20, %v1420_v1 }
 0x11c   : > { %v555_v37 = vmul.f32 %v547_v61, %v1406_v33  ;;  %v548_v22 = vadd.f32 0.2548296, %v540_v10  ;;  %v504_v33 = vadd.f32 -1.4531521, %v496_v13  ;;  %v510_v61 = vmul.f32 %v502_v43, %v1458_v17 }
 0x11d   : > { %v553_v26 = vmul.f32 %v545_v8, %v1410_v39  ;;  %v527_v39 = vmul.f32 %v519_v23, %v1433_v30  ;;  %v525_v40 = vmul.f32 %v517_v9, %v1436_v38  ;;  %v546_v44 = vadd.f32 0.2548296, %v538_v16 }
 0x11e   : > { %v595_v21 = vmul.f32 %v1133_v18, %v555_v37  ;;  %v556_v42 = vmul.f32 %v548_v22, %v1416_v53  ;;  %v512_v18 = vmul.f32 %v504_v33, %v1447_v50  ;;  %v518_v8 = vadd.f32 1.4214138, %v510_v61 }
 0x11f   : > { %v593_v11 = vmul.f32 %v1139_v29, %v553_v26  ;;  %v535_v19 = vadd.f32 -0.28449672, %v527_v39  ;;  %v533_v59 = vadd.f32 -0.28449672, %v525_v40  ;;  %v554_v29 = vmul.f32 %v546_v44, %v1420_v1 }
 0x120   : > { %v603_v35 = vsub.f32 1.0, %v595_v21  ;;  %v596_v47 = vmul.f32 %v1141_v48, %v556_v42  ;;  %v520_v49 = vadd.f32 1.4214138, %v512_v18  ;;  %v526_v15 = vmul.f32 %v518_v8, %v1458_v17 }
 0x121   : > { %v601_v45 = vsub.f32 1.0, %v593_v11  ;;  %v543_v5 = vmul.f32 %v535_v19, %v1433_v30  ;;  %v541_v7 = vmul.f32 %v533_v59, %v1436_v38  ;;  %v594_v48 = vmul.f32 %v1143_v60, %v554_v29 }
 0x122   : > { %v619_v46 = vsub.f32 0.0, %v603_v35  ;;  %v604_v63 = vsub.f32 1.0, %v596_v47  ;;  %v528_v6 = vmul.f32 %v520_v49, %v1447_v50  ;;  %v534_v23 = vadd.f32 -0.28449672, %v526_v15 }
 0x123   : > { %v617_v62 = vsub.f32 0.0, %v601_v45  ;;  %v551_v12 = vadd.f32 0.2548296, %v543_v5  ;;  %v549_v1 = vadd.f32 0.2548296, %v541_v7  ;;  %v602_v28 = vsub.f32 1.0, %v594_v48 }
 0x124   : > { %v627_v53 = vsel %vm611_vm1, %v619_v46, %v603_v35  ;;  %v620_v10 = vsub.f32 0.0, %v604_v63  ;;  %v536_v13 = vadd.f32 -0.28449672, %v528_v6  ;;  %v542_v36 = vmul.f32 %v534_v23, %v1458_v17  ;;  %v1151_v46 = vpop.eup %1150 }
 0x125   : > { %v635_v37 = vadd.f32 1.0, %v627_v53  ;;  %v625_v20 = vsel %vm609_vm2, %v617_v62, %v601_v45  ;;  %v559_v21 = vmul.f32 %v551_v12, %v1433_v30  ;;  %v557_v22 = vmul.f32 %v549_v1, %v1436_v38 }
 0x126   : > { %v628_v26 = vsel %vm612_vm3, %v620_v10, %v604_v63  ;;  %v544_v41 = vmul.f32 %v536_v13, %v1447_v50  ;;  %v618_v33 = vsub.f32 0.0, %v602_v28  ;;  %v633_v16 = vadd.f32 1.0, %v625_v20 }
 0x127   : > { %v636_v60 = vadd.f32 1.0, %v628_v26  ;;  %v643_v9 = vmul.f32 %v635_v37, %v1401_v3  ;;  %v599_v27 = vmul.f32 %v1449_v0, %v559_v21  ;;  %v597_v11 = vmul.f32 %v1147_v14, %v557_v22 }
 0x128   : > { %v552_v31 = vadd.f32 0.2548296, %v544_v41  ;;  %v626_v35 = vsel %vm610_vm4, %v618_v33, %v602_v28  ;;  %v418_v30 = vmul.f32 0.5, %v1366_v32  ;;  %v550_v40 = vadd.f32 0.2548296, %v542_v36 }
 0x129   : > { %v644_v34 = vmul.f32 %v636_v60, %v1430_v24  ;;  %v607_v42 = vsub.f32 1.0, %v599_v27  ;;  %v634_v38 = vadd.f32 1.0, %v626_v35  ;;  %v605_v18 = vsub.f32 1.0, %v597_v11 }
 0x12a   : > { %v560_v39 = vmul.f32 %v552_v31, %v1447_v50  ;;  %v641_v0 = vmul.f32 %v633_v16, %v1423_v4  ;;  %v558_v14 = vmul.f32 %v550_v40, %v1458_v17  ;;  %v424_v29 = vmul.f32 0.5, %v1382_v54  ;;  %v992_v54 = vld [vmem:[%s1568_s4] ss:$0 sm:$0xff] }
 0x12b   : > { %v658_v43 = vpack.c.bf16 %v644_v34, %v643_v9  ;;  %v623_v3 = vsub.f32 0.0, %v607_v42  ;;  %v642_v45 = vmul.f32 %v634_v38, %v418_v30  ;;  %v621_v24 = vsub.f32 0.0, %v605_v18 }
 0x12c   : > { %v600_v44 = vmul.f32 %v1149_v25, %v560_v39  ;;  %v598_v49 = vmul.f32 %v1151_v46, %v558_v14  ;;  %v421_v6 = vmul.f32 0.5, %v1380_v52 }
 0x12d   : > { %v631_v47 = vsel %vm615_vm5, %v623_v3, %v607_v42  ;;  %v657_v19 = vpack.c.bf16 %v642_v45, %v641_v0  ;;  %v629_v61 = vsel %vm613_vm6, %v621_v24, %v605_v18 }
 0x12e   : > { %v608_v32 = vsub.f32 1.0, %v600_v44  ;;  %v639_v59 = vadd.f32 1.0, %v631_v47  ;;  %v606_v4 = vsub.f32 1.0, %v598_v49  ;;  %v637_v53 = vadd.f32 1.0, %v629_v61 }
 0x12f   : > { %1045 = vmatprep.mubr.bf16.mxu1 %v657_v19 }
 0x130   : > { %v624_v50 = vsub.f32 0.0, %v608_v32  ;;  %1046 = vmatmul.mubr.bf16.vlgmr.msra.gmra.mrb[0].mxu1 %v658_v43  ;;  %v622_v62 = vsub.f32 0.0, %v606_v4  ;;  %v647_v57 = vmul.f32 %v639_v59, %v423_v55  ;;  %v645_v48 = vmul.f32 %v637_v53, %v421_v6 }
 0x132   : > { %v632_v25 = vsel %vm616_vm7, %v624_v50, %v608_v32  ;;  %v630_v5 = vsel %vm614_vm8, %v622_v62, %v606_v4 }
 0x133   : > { %v640_v17 = vadd.f32 1.0, %v632_v25  ;;  %v638_v7 = vadd.f32 1.0, %v630_v5 }
 0x135   : > { %v648_v63 = vmul.f32 %v640_v17, %v424_v29  ;;  %v646_v51 = vmul.f32 %v638_v7, %v422_v58 }
 0x137   : > { %v660_v8 = vpack.c.bf16 %v648_v63, %v647_v57  ;;  %v659_v37 = vpack.c.bf16 %v646_v51, %v645_v48 }
 0x139   : > { %1049 = vmatprep.mubr.bf16.mxu1 %v659_v37 }
 0x13a   : > { %1050 = vmatmul.mubr.bf16.gmra.mrb[4].mxu1 %v660_v8 }
 0x203   : > { %v1047_v2 = vpop.f32.mrb[0].mxu1 }
 0x204   : > { %v826_v10 = vadd.f32 %v1047_v2, %v992_v54  ;;  %v759_v52 = vpop.f32.mrb[1].mxu1 }
 0x205   : > { %v824_v12 = vadd.f32 %v992_v54, %v759_v52  ;;  %v1048_v56 = vpop.f32.mrb[2].mxu1 }
 0x206   : > { %834 = vst [vmem:[%s270_s8 + $0x10] sm:$0xff] %v826_v10  ;;  %v827_v13 = vadd.f32 %v1048_v56, %v992_v54  ;;  %v762_v1 = vpop.f32.mrb[3].mxu1 }
 0x207   : > { %832 = vst [vmem:[%s270_s8] sm:$0xff] %v824_v12  ;;  %v825_v15 = vadd.f32 %v992_v54, %v762_v1 }
 0x208   : > { %835 = vst [vmem:[%s270_s8 + $0x18] sm:$0xff] %v827_v13 }
 0x209   : > { %833 = vst [vmem:[%s270_s8 + $0x8] sm:$0xff] %v825_v15 }
 0x20d   : > { %v1051_v28 = vpop.f32.mrb[4].mxu1 }
 0x20e   : > { %v830_v20 = vadd.f32 %v1051_v28, %v992_v54  ;;  %v775_v26 = vpop.f32.mrb[5].mxu1 }
 0x20f   : > { %v828_v21 = vadd.f32 %v992_v54, %v775_v26  ;;  %v1052_v41 = vpop.f32.mrb[6].mxu1 }
 0x210   : > { %838 = vst [vmem:[%s270_s8 + $0x30] sm:$0xff] %v830_v20  ;;  %v831_v60 = vadd.f32 %v1052_v41, %v992_v54  ;;  %v778_v22 = vpop.f32.mrb[7].mxu1 }
 0x211   : > { %836 = vst [vmem:[%s270_s8 + $0x20] sm:$0xff] %v828_v21  ;;  %v829_v23 = vadd.f32 %v992_v54, %v778_v22 }
 0x212   : > { %839 = vst [vmem:[%s270_s8 + $0x38] sm:$0xff] %v831_v60 }
 0x213   : > { %837 = vst [vmem:[%s270_s8 + $0x28] sm:$0xff] %v829_v23 }
 0x214   : > { %1165 = shalt.err (!%p1162_p5)
}
 0x215   : > { %s1166_s24 = scalar_lea.hbm %s1512_s13, 1024  ;;  %s1170_s29 = scalar_lea.hbm %s1569_s5, 2048 }
 0x216   : > { %p1167_p6 = scmp.ne.s32.totalorder %s1512_s13, %s1166_s24  ;;  %p1171_p10 = scmp.lt.u32.totalorder %s1512_s13, %s1569_s5 }
 0x217   : > { %p1172_p11 = scmp.lt.u32.totalorder %s1170_s29, %s1166_s24  ;;  %p1174_p13 = scmp.lt.u32.totalorder %s1166_s24, %s1512_s13 }
 0x218   : > { %p1168_p7 = pnand %p1167_p6, %p1305_p4 }
 0x219   : > { %p1173_p12 = por %p1172_p11, %p1171_p10 }
 0x21a   : > { %p1169_p9 = pneg %p1168_p7 }
 0x21b   : > { %p1175_p0 = por %p1174_p13, %p1173_p12 }
 0x21d   : > { %p1176_p1 = pnand %p1175_p0, %p1169_p9 }
 0x21f   : > { %1179 = shalt.err (!%p1176_p1)
}
 0x220   : > { %s1233_s9 = smov 128   ;;  %s1234_s11 = smov 8  }
 0x221   : > { %1053 = dma.vmem_to_hbm [thread:$0]  (%p1305_p4), %s1514_s10, 1024, %s1512_s13, %s1518_s21, %s1233_s9, %s1233_s9, %s1234_s11  }
 0x222 PF: > { %p1059_p2 = scmp.ge.s32.totalorder %s1230_s23, 2  ;;  %s869_s12 = sand.u32 1, %s1210_s18  }
 0x223   : > { %s870_s14 = scalar_lea.sflag [#allocation4], %s869_s12 }
 0x224   : > { %p1056_p3 = pnand %p1059_p2, %p1312_p8 }
 0x226   : > { %1205 = dma.done.wait (!%p1056_p3), %s870_s14, 1024  }
 0x227   : > { %1207 = vsyncadd (!%p1056_p3), %s870_s14, 4294966272  ;;  %s18_s23 = sadd.s32 1, %s1230_s23   ;;  %s1572_s18 = smov %s1214_s19 }
 0x228   : > { %p15_p5 = scmp.ge.s32.totalorder %s18_s23, 4   ;;  %s1573_s19 = smov %s1218_s20 }
 0x229   : > { %s1574_s20 = smov %s1318_s6  ;;  %s1575_s21 = smov %s1226_s22 }
 0x22a   : > { %s1576_s22 = smov %s1578_s26  ;;  %17 = sbr.rel (!%p15_p5) target bundleno = 4 (0x4), region = 92 }
 0x231   :  { %875 = vsyncpa [#allocation4], 1 }
 0x232   :  { %877 = vsyncpa [#allocation4 + $0x1], 1 }

</bundles_post_ra>
